<compile_context>
chip_gen: v7x
topology: tpu7x:2x2x1
jax: 0.10.0
libtpu: 0.0.40
codegen_flags: <defaults>
</compile_context>

<pallas_src>
import functools

import jax
import jax.numpy as jnp
from jax import lax
from jax.experimental import pallas as pl
from jax.experimental.pallas import tpu as pltpu

FEATURES = 8
LANES = 128
PACK = LANES // FEATURES      # 16 batch rows packed per 128-lane row


def _round_up(n, m):
    return ((n + m - 1) // m) * m


def _logreg_kernel(x_ref, w_ref, b_ref, o_ref):
    """One batch tile.

    x_ref : VMEM (TR, 128)  packed x: x_ref[r, 8j+k] = x[16r + j, k]
    w_ref : VMEM (128, 16)  block-diagonal weights: w_ref[8j+k, j] = w[k]
    b_ref : SMEM (1,)       bias scalar
    o_ref : VMEM (TR, 16)   sigmoid(x . w + b); o_ref[r, j] <-> batch row 16r+j
    """
    # One MXU matmul per tile (MXU is otherwise idle); HIGHEST precision keeps
    # the f32 path exact.  EUP handles the sigmoid's exp.
    z = jnp.dot(x_ref[...].astype(jnp.float32), w_ref[...],
                preferred_element_type=jnp.float32,
                precision=lax.Precision.HIGHEST) + b_ref[0]
    o_ref[...] = jax.nn.sigmoid(z).astype(o_ref.dtype)


@functools.partial(jax.jit, static_argnames=("block_batch",))
def binary_classifier_forward(x, weight, bias, *, block_batch=131072):
    """sigmoid(x @ weight.T + bias).  x: [B, 8], weight: [1, 8], bias: [1] -> [B, 1]."""
    B, F = x.shape
    assert F == FEATURES and weight.shape == (1, FEATURES) and bias.shape == (1,)

    # Pack 16 batch rows into each 128-lane row.  Free contiguous reshape when
    # B % 16 == 0; otherwise a <=15-row pad that XLA fuses with the reshape.
    b16 = _round_up(B, PACK)
    if b16 != B:
        x = jnp.pad(x, ((0, b16 - B), (0, 0)))
    rows = b16 // PACK
    xr = x.reshape(rows, LANES)

    # Block-diagonal weight so the packed matmul computes one dot(x_row, w)
    # per packed row; bias stays a scalar in SMEM.
    w = weight.reshape(FEATURES).astype(jnp.float32)
    wsel = jnp.kron(jnp.eye(PACK, dtype=jnp.float32), w[:, None])   # (128, 16)
    bvec = bias.astype(jnp.float32)                                 # (1,)

    # Tile rows of the packed view.  Default 8192 rows = 131072 batch rows
    # (4 MiB/input block): large enough to amortize per-step overhead, small
    # enough for v5e's 16 MiB default scoped VMEM and >=2 grid steps on v7x
    # for large B.
    block_rows = max(8, _round_up(block_batch, PACK * 8) // PACK)
    tr = min(block_rows, _round_up(rows, 8))
    grid = pl.cdiv(rows, tr)

    out = pl.pallas_call(
        _logreg_kernel,
        out_shape=jax.ShapeDtypeStruct((rows, PACK), x.dtype),
        grid_spec=pl.GridSpec(
            grid=(grid,),
            in_specs=[
                pl.BlockSpec((tr, LANES), lambda i: (i, 0)),        # packed x tile
                pl.BlockSpec((LANES, PACK), lambda i: (0, 0)),      # Wsel (8 KiB, constant)
                pl.BlockSpec(memory_space=pltpu.MemorySpace.SMEM),  # bias scalar
            ],
            out_specs=pl.BlockSpec((tr, PACK), lambda i: (i, 0)),
        ),
        compiler_params=pltpu.CompilerParams(
            # Independent batch tiles: lets v7x shard grid steps across both TCs.
            dimension_semantics=("parallel",),
        ),
        cost_estimate=pl.CostEstimate(
            flops=2 * rows * LANES * PACK,   # MXU flops (16 useful per batch row)
            transcendentals=b16,             # one exp per row
            bytes_accessed=36 * b16,         # 32 B read + 4 B write per row
        ),
    )(xr, wsel, bvec)

    # (R, 16) -> (B, 1): free contiguous reshape, drop the <=15 padded rows.
    return out.reshape(b16)[:B].reshape(B, 1)


if __name__ == "__main__":
    key = jax.random.PRNGKey(0)
    kx, kw, kb = jax.random.split(key, 3)

    # Non-multiple-of-16 batch: exercises the packing pad, a multi-step
    # (grid=3) pipeline, and a partial (masked) edge tile.
    B, F = 300, 8
    x = jax.random.normal(kx, (B, F), dtype=jnp.float32)

    # PyTorch-default-style init: U(-1/sqrt(fan_in), +1/sqrt(fan_in))
    bound = 1.0 / jnp.sqrt(jnp.float32(F))
    weight = jax.random.uniform(kw, (1, F), minval=-bound, maxval=bound,
                                dtype=jnp.float32)
    bias = jax.random.uniform(kb, (1,), minval=-bound, maxval=bound,
                              dtype=jnp.float32)

    out = binary_classifier_forward(x, weight, bias, block_batch=128)
    out = jax.block_until_ready(out)

    # Reference check in plain JAX.
    ref = jax.nn.sigmoid(x @ weight.T + bias)
    assert out.shape == (B, 1)
    assert jnp.allclose(out, ref, atol=1e-5, rtol=1e-5), \
        float(jnp.max(jnp.abs(out - ref)))

    print("KERNEL_OK")
</pallas_src>

<mosaic_0001>
module attributes {stable_mosaic.version = 11 : i64} {
  func.func @_logreg_kernel(%arg0: i32, %arg1: memref<8x128xf32, #tpu.memory_space<vmem>>, %arg2: memref<128x16xf32, #tpu.memory_space<vmem>>, %arg3: memref<1xf32, #tpu.memory_space<smem>>, %arg4: memref<8x16xf32, #tpu.memory_space<vmem>>) attributes {dimension_semantics = [#tpu.dimension_semantics<parallel>], iteration_bounds = array<i64: 3>, scalar_prefetch = 0 : i64, scratch_operands = 0 : i64, tpu.core_type = #tpu.core_type<tc>, window_params = [{transform_indices = @transform_0, window_bounds = array<i64: 8, 128>}, {pipeline_mode = #tpu.pipeline_mode<synchronous>, transform_indices = @transform_1, window_bounds = array<i64: 128, 16>}, {transform_indices = @transform_2, window_bounds = array<i64: 1>}, {transform_indices = @transform_3, window_bounds = array<i64: 8, 16>}]} {
    %c0 = arith.constant 0 : index
    %c0_0 = arith.constant 0 : index
    %0 = vector.load %arg1[%c0, %c0_0] : memref<8x128xf32, #tpu.memory_space<vmem>>, vector<8x128xf32>
    %c0_1 = arith.constant 0 : index
    %c0_2 = arith.constant 0 : index
    %1 = vector.load %arg2[%c0_1, %c0_2] : memref<128x16xf32, #tpu.memory_space<vmem>>, vector<128x16xf32>
    %cst = arith.constant dense<0.000000e+00> : vector<8x16xf32>
    %2 = tpu.matmul %0, %1, %cst {dimension_numbers = #tpu.dot_dimension_numbers<[1], [0], [0], [1], [0, 0, 1, 1], [], []>, precision = #tpu.contract_precision<fp32>} : vector<8x128xf32>, vector<128x16xf32>, vector<8x16xf32> -> vector<8x16xf32>
    %c0_3 = arith.constant 0 : index
    %3 = memref.load %arg3[%c0_3] : memref<1xf32, #tpu.memory_space<smem>>
    %4 = vector.broadcast %3 : f32 to vector<8x16xf32>
    %5 = arith.addf %2, %4 : vector<8x16xf32>
    %6 = arith.negf %5 : vector<8x16xf32>
    %7 = math.exp %6 : vector<8x16xf32>
    %cst_4 = arith.constant 1.000000e+00 : f32
    %8 = vector.broadcast %cst_4 : f32 to vector<8x16xf32>
    %9 = arith.addf %8, %7 : vector<8x16xf32>
    %10 = arith.divf %8, %9 : vector<8x16xf32>
    %c0_5 = arith.constant 0 : index
    %c0_6 = arith.constant 0 : index
    %11 = vector.load %arg4[%c0_5, %c0_6] : memref<8x16xf32, #tpu.memory_space<vmem>>, vector<8x16xf32>
    tpu.vector_store %arg4[%c0_5, %c0_6], %10 {strides = array<i32>} : memref<8x16xf32, #tpu.memory_space<vmem>>, vector<8x16xf32>,
    return
  }
  func.func @transform_0(%arg0: i32) -> (i32, i32) {
    %c0_i32 = arith.constant 0 : i32
    %c0_i32_0 = arith.constant 0 : i32
    return %arg0, %c0_i32 : i32, i32
  }
  func.func @transform_1(%arg0: i32) -> (i32, i32) {
    %c0_i32 = arith.constant 0 : i32
    %c0_i32_0 = arith.constant 0 : i32
    %c0_i32_1 = arith.constant 0 : i32
    return %c0_i32, %c0_i32_0 : i32, i32
  }
  func.func @transform_2(%arg0: i32) -> i32 {
    %c0_i32 = arith.constant 0 : i32
    %c0_i32_0 = arith.constant 0 : i32
    return %c0_i32 : i32
  }
  func.func @transform_3(%arg0: i32) -> (i32, i32) {
    %c0_i32 = arith.constant 0 : i32
    %c0_i32_0 = arith.constant 0 : i32
    return %arg0, %c0_i32 : i32, i32
  }
}

</mosaic_0001>

<bundles_post_ra>
// kernel: binary_classifier_forward.1
= control target key start
LH: loop header
LB: loop body
LE: loop exit
PB: predicated region body
PF: predicated region fallthrough
CT: control target
= control target key end

     0   :  { %s1413_s14 = smov 0   ;;  %s1748_s0 = inlined_call_operand.vmem [shape: f32[19,128], index: 0, kind: input, shape index: {}]   ;;  %s1749_s1 = inlined_call_operand.vmem [shape: f32[128,16], index: 1, kind: input, shape index: {}]   ;;  %s1750_s2 = inlined_call_operand.<no memory space> [shape: f32[1], index: 2, kind: input, shape index: {}]   ;;  %s1751_s3 = inlined_call_operand.vmem [shape: f32[19,16], index: 3, kind: output, shape index: {}]  }
   0x1   :  { %8 = sst [smem:[#allocation2]] %s1750_s2 }
   0x2 LB: > { %s888_s15 = sadd.s32 4294967295, %s1385_s14   ;;  %p892_p0 = scmp.ge.s32.totalorder %s1385_s14, 1  ;;  %s1385_s14 = sphi %s1413_s14, %s14_s14  }
   0x3   : > { %p137_p1 = scmp.lt.s32.totalorder %s1385_s14, 4 }
   0x5   : > { %p138_p2 = pnand %p892_p0, %p137_p1 }
   0x6   : > { %v168_v0 = vld [vmem:[%s1749_s1] sm:$0xff] (!%p138_p2)  ;;  %v169_v1 = vld [vmem:[%s1749_s1 + $0x8] sm:$0xff] (!%p138_p2)  ;;  %v170_v2 = vld [vmem:[%s1749_s1 + $0x10] sm:$0xff] (!%p138_p2)  ;;  %v1387_v3 = vmov (!%p138_p2), 0.0|0.0   ;;  %vm1388_vm0 = vmmov (!%p138_p2), 0   ;;  %v1389_v11 = vmov (!%p138_p2), 0.0  }
   0x7   : > { %141 = sbr.rel (%p138_p2) target bundleno = 349 (0x15d), region = 32  ;;  %1210 = vmatprep.subr.bf16.mxu1 (!%p138_p2), %v1387_v3  ;;  %1282 = vmatprep.subr.bf16.mxu0 (!%p138_p2), %v1387_v3  ;;  %v187_v4 = vand.u32 (!%p138_p2), 4294901760, %v168_v0  ;;  %v190_v5 = vand.u32 (!%p138_p2), 4294901760, %v169_v1  ;;  %v171_v6 = vld [vmem:[%s1749_s1 + $0x18] sm:$0xff] (!%p138_p2)  ;;  %v193_v7 = vand.u32 (!%p138_p2), 4294901760, %v170_v2  ;;  %v1438_v9 = vld [vmem:[%s1749_s1 + $0x20] sm:$0xff] (!%p138_p2) }
   0x8   : > { %v196_v8 = vand.u32 (!%p138_p2), 4294901760, %v171_v6  ;;  %v1443_v10 = vld [vmem:[%s1749_s1 + $0x28] sm:$0xff] (!%p138_p2)  ;;  %1032 = vmatprep.mubr.msk.f32.mxu1 (!%p138_p2), %vm1388_vm0, %v1389_v11  ;;  %1137 = vmatprep.mubr.msk.f32.mxu0 (!%p138_p2), %vm1388_vm0, %v1389_v11  ;;  %p159_p3 = scmp.lt.s32.totalorder (!%p138_p2), %s888_s15, 2  ;;  %v199_v14 = vand.u32 (!%p138_p2), 4294901760, %v1438_v9  ;;  %v1464_v16 = vld [vmem:[%s1749_s1 + $0x30] sm:$0xff] (!%p138_p2)  ;;  %v1469_v17 = vld [vmem:[%s1749_s1 + $0x38] sm:$0xff] (!%p138_p2) }
   0x9   : > { %v1449_v12 = vpack.c.bf16 (!%p138_p2), %v190_v5, %v187_v4  ;;  %v202_v15 = vand.u32 (!%p138_p2), 4294901760, %v1443_v10  ;;  %v205_v19 = vand.u32 (!%p138_p2), 4294901760, %v1464_v16  ;;  %v208_v20 = vand.u32 (!%p138_p2), 4294901760, %v1469_v17  ;;  %v1483_v21 = vld [vmem:[%s1749_s1 + $0x40] sm:$0xff] (!%p138_p2)  ;;  %v1488_v22 = vld [vmem:[%s1749_s1 + $0x48] sm:$0xff] (!%p138_p2)  ;;  %v1506_v27 = vld [vmem:[%s1749_s1 + $0x50] sm:$0xff] (!%p138_p2) }
   0xa   : > { %v1453_v13 = vpack.c.bf16 (!%p138_p2), %v196_v8, %v193_v7  ;;  %v211_v24 = vand.u32 (!%p138_p2), 4294901760, %v1483_v21  ;;  %v214_v25 = vand.u32 (!%p138_p2), 4294901760, %v1488_v22  ;;  %v1511_v28 = vld [vmem:[%s1749_s1 + $0x58] sm:$0xff] (!%p138_p2)  ;;  %v1513_v29 = vsub.f32 (!%p138_p2), %v168_v0, %v187_v4  ;;  %v1528_v35 = vld [vmem:[%s1749_s1 + $0x60] sm:$0xff] (!%p138_p2)  ;;  %v1535_v36 = vld [vmem:[%s1749_s1 + $0x68] sm:$0xff] (!%p138_p2)  ;;  %s184_s25 = sld [smem:[#allocation2]] (!%p138_p2) }
   0xb   : > { %1212 = vmatpush3.bf16.msra.mxu1 (!%p138_p2), %v1449_v12  ;;  %1284 = vmatpush3.bf16.msra.mxu0 (!%p138_p2), %v1449_v12  ;;  %v1474_v18 = vpack.c.bf16 (!%p138_p2), %v202_v15, %v199_v14  ;;  %v1497_v23 = vpack.c.bf16 (!%p138_p2), %v208_v20, %v205_v19  ;;  %v1517_v31 = vsub.f32 (!%p138_p2), %v169_v1, %v190_v5  ;;  %v217_v33 = vand.u32 (!%p138_p2), 4294901760, %v1506_v27  ;;  %v1557_v43 = vld [vmem:[%s1749_s1 + $0x70] sm:$0xff] (!%p138_p2)  ;;  %v1562_v44 = vld [vmem:[%s1749_s1 + $0x78] sm:$0xff] (!%p138_p2) }
   0xc   : > { %1213 = vmatprep.subr.bf16.mxu1 (!%p138_p2), %v1387_v3  ;;  %1285 = vmatprep.subr.bf16.mxu0 (!%p138_p2), %v1387_v3  ;;  %v1521_v32 = vpack.c.bf16 (!%p138_p2), %v214_v25, %v211_v24  ;;  %v220_v34 = vand.u32 (!%p138_p2), 4294901760, %v1511_v28  ;;  %v1537_v37 = vsub.f32 (!%p138_p2), %v170_v2, %v193_v7  ;;  %v1539_v38 = vsub.f32 (!%p138_p2), %v171_v6, %v196_v8 }
   0xd   : > { %v223_v39 = vand.u32 (!%p138_p2), 4294901760, %v1528_v35  ;;  %v226_v42 = vand.u32 (!%p138_p2), 4294901760, %v1535_v36  ;;  %v280_v45 = vand.u32 (!%p138_p2), 4294901760, %v1513_v29  ;;  %v287_v46 = vand.u32 (!%p138_p2), 4294901760, %v1517_v31 }
   0xe   : > { %s1753_s15 = smov (!%p159_p3, %s888_s15), 2  ;;  %v1551_v41 = vpack.c.bf16 %v220_v34, %v217_v33  ;;  %v1569_v47 = vsub.f32 %v1438_v9, %v199_v14  ;;  %v1572_v48 = vsub.f32 %v1443_v10, %v202_v15  ;;  %v229_v49 = vand.u32 4294901760, %v1557_v43 }
   0xf   : > { %s893_s4 = sshll.u32 %s1753_s15, 3  ;;  %1215 = vmatpush3.bf16.msra.mxu1 %v1453_v13  ;;  %1287 = vmatpush3.bf16.msra.mxu0 %v1453_v13  ;;  %v232_v50 = vand.u32 4294901760, %v1562_v44  ;;  %v294_v52 = vand.u32 4294901760, %v1537_v37  ;;  %v1584_v53 = vpack.c.bf16 %v226_v42, %v223_v39  ;;  %v281_v54 = vsub.f32 %v1513_v29, %v280_v45 }
  0x10   : > { %1216 = vmatprep.subr.bf16.mxu1 %v1387_v3  ;;  %1288 = vmatprep.subr.bf16.mxu0 %v1387_v3  ;;  %s162_s11 = scalar_lea.vmem %s1748_s0, %s893_s4  ;;  %v288_v55 = vsub.f32 %v1517_v31, %v287_v46  ;;  %v301_v56 = vand.u32 4294901760, %v1539_v38  ;;  %v1592_v57 = vsub.f32 %v1464_v16, %v205_v19  ;;  %v1595_v58 = vsub.f32 %v1469_v17, %v208_v20  ;;  %s166_s28 = scalar_lea.vmem %s1751_s3, %s893_s4 }
  0x11   : > { %v167_v26 = vld [vmem:[%s162_s11] sm:$0xff]  ;;  %v295_v60 = vsub.f32 %v1537_v37, %v294_v52  ;;  %v308_v61 = vand.u32 4294901760, %v1569_v47  ;;  %v315_v62 = vand.u32 4294901760, %v1572_v48  ;;  %v1607_v63 = vpack.c.bf16 %v232_v50, %v229_v49 }
  0x12   : > { %v1515_v30 = vand.u32 4294901760, %v167_v26  ;;  %v282_v0 = vand.u32 4294901760, %v281_v54  ;;  %v289_v1 = vand.u32 4294901760, %v288_v55  ;;  %v302_v2 = vsub.f32 %v1539_v38, %v301_v56 }
  0x13   : > { %1218 = vmatpush3.bf16.msra.mxu1 %v1474_v18  ;;  %1290 = vmatpush3.bf16.msra.mxu0 %v1474_v18  ;;  %v1613_v4 = vsub.f32 %v1483_v21, %v211_v24  ;;  %v1616_v5 = vsub.f32 %v1488_v22, %v214_v25  ;;  %v1307_v6 = vpack.c.bf16 %v287_v46, %v280_v45  ;;  %v296_v8 = vand.u32 4294901760, %v295_v60 }
  0x14   : > { %1219 = vmatprep.subr.bf16.mxu1 %v1387_v3  ;;  %1291 = vmatprep.subr.bf16.mxu0 %v1387_v3  ;;  %v1543_v40 = vsub.f32 %v167_v26, %v1515_v30  ;;  %v309_v9 = vsub.f32 %v1569_v47, %v308_v61  ;;  %v316_v10 = vsub.f32 %v1572_v48, %v315_v62  ;;  %v303_v15 = vand.u32 4294901760, %v302_v2 }
  0x15   : > { %v1235_v14 = vpack.c.bf16 %v289_v1, %v282_v0  ;;  %v322_v16 = vand.u32 4294901760, %v1592_v57  ;;  %v329_v17 = vand.u32 4294901760, %v1595_v58  ;;  %v1629_v19 = vsub.f32 %v1506_v27, %v217_v33 }
  0x16   : > { %v269_v51 = vand.u32 4294901760, %v1543_v40  ;;  %v1634_v20 = vsub.f32 %v1511_v28, %v220_v34  ;;  %v1310_v21 = vpack.c.bf16 %v301_v56, %v294_v52  ;;  %v310_v22 = vand.u32 4294901760, %v309_v9 }
  0x17   : > { %1221 = vmatpush3.bf16.msra.mxu1 %v1497_v23  ;;  %1293 = vmatpush3.bf16.msra.mxu0 %v1497_v23  ;;  %v317_v24 = vand.u32 4294901760, %v316_v10  ;;  %v336_v25 = vand.u32 4294901760, %v1613_v4  ;;  %v1238_v26 = vpack.c.bf16 %v303_v15, %v296_v8  ;;  %v323_v45 = vsub.f32 %v1592_v57, %v322_v16 }
  0x18   : > { %1222 = vmatprep.subr.bf16.mxu1 %v1387_v3  ;;  %1294 = vmatprep.subr.bf16.mxu0 %v1387_v3  ;;  %v270_v59 = vsub.f32 %v1543_v40, %v269_v51  ;;  %v330_v27 = vsub.f32 %v1595_v58, %v329_v17  ;;  %v343_v33 = vand.u32 4294901760, %v1616_v5  ;;  %v1645_v28 = vsub.f32 %v1528_v35, %v223_v39 }
  0x19   : > { %v1650_v34 = vsub.f32 %v1535_v36, %v226_v42  ;;  %v1241_v46 = vpack.c.bf16 %v317_v24, %v310_v22  ;;  %v337_v52 = vsub.f32 %v1613_v4, %v336_v25  ;;  %v350_v54 = vand.u32 4294901760, %v1629_v19 }
  0x1a   : > { %v271_v7 = vand.u32 4294901760, %v270_v59  ;;  %v324_v35 = vand.u32 4294901760, %v323_v45  ;;  %v331_v39 = vand.u32 4294901760, %v330_v27  ;;  %v344_v55 = vsub.f32 %v1616_v5, %v343_v33 }
  0x1b   : > { %1224 = vmatpush3.bf16.msra.mxu1 %v1521_v32  ;;  %1296 = vmatpush3.bf16.msra.mxu0 %v1521_v32  ;;  %v357_v36 = vand.u32 4294901760, %v1634_v20  ;;  %v1665_v42 = vsub.f32 %v1557_v43, %v229_v49  ;;  %v1670_v56 = vsub.f32 %v1562_v44, %v232_v50  ;;  %v1316_v59 = vpack.c.bf16 %v329_v17, %v322_v16 }
  0x1c   : > { %1225 = vmatprep.subr.bf16.mxu1 %v1387_v3  ;;  %1297 = vmatprep.subr.bf16.mxu0 %v1387_v3  ;;  %v338_v60 = vand.u32 4294901760, %v337_v52  ;;  %v1244_v0 = vpack.c.bf16 %v331_v39, %v324_v35  ;;  %v345_v1 = vand.u32 4294901760, %v344_v55  ;;  %v371_v43 = vand.u32 4294901760, %v1650_v34 }
  0x1d   : > { %v358_v2 = vsub.f32 %v1634_v20, %v357_v36  ;;  %v1319_v44 = vpack.c.bf16 %v343_v33, %v336_v25  ;;  %v385_v10 = vand.u32 4294901760, %v1670_v56  ;;  %vm833_vm1 = vcmask 130048  }
  0x1e   : > { %v372_v9 = vsub.f32 %v1650_v34, %v371_v43 }
  0x1f   : > { %1227 = vmatpush3.bf16.msra.mxu1 %v1551_v41  ;;  %1299 = vmatpush3.bf16.msra.mxu0 %v1551_v41  ;;  %v359_v8 = vand.u32 4294901760, %v358_v2  ;;  %v386_v22 = vsub.f32 %v1670_v56, %v385_v10 }
  0x20   : > { %1228 = vmatprep.subr.bf16.mxu1 %v1387_v3  ;;  %1300 = vmatprep.subr.bf16.mxu0 %v1387_v3  ;;  %v373_v17 = vand.u32 4294901760, %v372_v9 }
  0x21   : > { %v387_v45 = vand.u32 4294901760, %v386_v22 }
  0x23   : > { %1230 = vmatpush3.bf16.msra.mxu1 %v1584_v53  ;;  %1302 = vmatpush3.bf16.msra.mxu0 %v1584_v53 }
  0x24   : > { %1231 = vmatprep.subr.bf16.mxu1 %v1387_v3  ;;  %1303 = vmatprep.subr.bf16.mxu0 %v1387_v3 }
  0x27   : > { %1233 = vmatpush3.bf16.msra.mxu1 %v1607_v63  ;;  %1305 = vmatpush3.bf16.msra.mxu0 %v1607_v63 }
  0x28   : > { %1234 = vmatprep.subr.bf16.mxu1 %v1387_v3  ;;  %1306 = vmatprep.subr.bf16.mxu0 %v1387_v3 }
  0x2a   : > { %1033 = vmatmul.mubr.f32.vlgmr.msra.gmra.mrb[0].mxu1 %v271_v7  ;;  %1138 = vmatmul.mubr.f32.vlgmr.msra.gmra.mrb[0].mxu0 %v269_v51  ;;  %v1313_v51 = vpack.c.bf16 %v315_v62, %v308_v61  ;;  %v351_v61 = vsub.f32 %v1629_v19, %v350_v54  ;;  %v364_v62 = vand.u32 4294901760, %v1645_v28  ;;  %v1247_v7 = vpack.c.bf16 %v345_v1, %v338_v60 }
  0x2b   : > { %1236 = vmatpush3.bf16.msra.mxu1 %v1235_v14  ;;  %1308 = vmatpush3.bf16.msra.mxu0 %v1307_v6  ;;  %v378_v6 = vand.u32 4294901760, %v1665_v42  ;;  %v1322_v14 = vpack.c.bf16 %v357_v36, %v350_v54 }
  0x2c   : > { %1237 = vmatprep.subr.bf16.mxu1 %v1387_v3  ;;  %1309 = vmatprep.subr.bf16.mxu0 %v1387_v3  ;;  %v352_v49 = vand.u32 4294901760, %v351_v61  ;;  %v365_v50 = vsub.f32 %v1645_v28, %v364_v62  ;;  %v1325_v25 = vpack.c.bf16 %v371_v43, %v364_v62 }
  0x2d   : > { %1067 = vmatprep.mubr.msk.f32.mxu1 %vm1388_vm0, %v1389_v11  ;;  %1172 = vmatprep.mubr.msk.f32.mxu0 %vm1388_vm0, %v1389_v11  ;;  %v1328_v33 = vpack.c.bf16 %v385_v10, %v378_v6 }
  0x2e   : > { %v366_v15 = vand.u32 4294901760, %v365_v50  ;;  %v1250_v16 = vpack.c.bf16 %v359_v8, %v352_v49 }
  0x2f   : > { %1239 = vmatpush3.bf16.msra.mxu1 %v1238_v26  ;;  %1311 = vmatpush3.bf16.msra.mxu0 %v1310_v21  ;;  %v379_v21 = vsub.f32 %v1665_v42, %v378_v6 }
  0x30   : > { %1240 = vmatprep.subr.bf16.mxu1 %v1387_v3  ;;  %1312 = vmatprep.subr.bf16.mxu0 %v1387_v3  ;;  %v1253_v24 = vpack.c.bf16 %v373_v17, %v366_v15 }
  0x31   : > { %v380_v26 = vand.u32 4294901760, %v379_v21 }
  0x33   : > { %1242 = vmatpush3.bf16.msra.mxu1 %v1241_v46  ;;  %1314 = vmatpush3.bf16.msra.mxu0 %v1313_v51  ;;  %v1256_v27 = vpack.c.bf16 %v387_v45, %v380_v26  ;;  %v1259_v46 = vpack.c.bf16 %v1517_v31, %v1513_v29  ;;  %v1262_v51 = vpack.c.bf16 %v1539_v38, %v1537_v37  ;;  %v185_v31 = vstv %s184_s25 }
  0x34   : > { %1243 = vmatprep.subr.bf16.mxu1 %v1387_v3  ;;  %1315 = vmatprep.subr.bf16.mxu0 %v1387_v3  ;;  %v1265_v29 = vpack.c.bf16 %v1572_v48, %v1569_v47 }
  0x37   : > { %1245 = vmatpush3.bf16.msra.mxu1 %v1244_v0  ;;  %1317 = vmatpush3.bf16.msra.mxu0 %v1316_v59 }
  0x38   : > { %1246 = vmatprep.subr.bf16.mxu1 %v1387_v3  ;;  %1318 = vmatprep.subr.bf16.mxu0 %v1387_v3 }
  0x3b   : > { %1248 = vmatpush3.bf16.msra.mxu1 %v1247_v7  ;;  %1320 = vmatpush3.bf16.msra.mxu0 %v1319_v44 }
  0x3c   : > { %1249 = vmatprep.subr.bf16.mxu1 %v1387_v3  ;;  %1321 = vmatprep.subr.bf16.mxu0 %v1387_v3 }
  0x3f   : > { %1251 = vmatpush3.bf16.msra.mxu1 %v1250_v16  ;;  %1323 = vmatpush3.bf16.msra.mxu0 %v1322_v14 }
  0x40   : > { %1252 = vmatprep.subr.bf16.mxu1 %v1387_v3  ;;  %1324 = vmatprep.subr.bf16.mxu0 %v1387_v3 }
  0x43   : > { %1254 = vmatpush3.bf16.msra.mxu1 %v1253_v24  ;;  %1326 = vmatpush3.bf16.msra.mxu0 %v1325_v25 }
  0x44   : > { %1255 = vmatprep.subr.bf16.mxu1 %v1387_v3  ;;  %1327 = vmatprep.subr.bf16.mxu0 %v1387_v3 }
  0x47   : > { %1257 = vmatpush3.bf16.msra.mxu1 %v1256_v27  ;;  %1329 = vmatpush3.bf16.msra.mxu0 %v1328_v33 }
  0x48   : > { %1258 = vmatprep.subr.bf16.mxu1 %v1387_v3  ;;  %1330 = vmatprep.subr.bf16.mxu0 %v1387_v3 }
  0x4a   : > { %1068 = vmatmul.mubr.f32.vlgmr.msra.gmra.mrb[0].mxu1 %v1515_v30  ;;  %1173 = vmatmul.mubr.f32.vlgmr.msra.gmra.mrb[0].mxu0 %v1515_v30 }
  0x4b   : > { %1260 = vmatpush3.bf16.msra.mxu1 %v1259_v46  ;;  %1332 = vmatpush3.bf16.msra.mxu0 %v1449_v12  ;;  %v1268_v12 = vpack.c.bf16 %v1595_v58, %v1592_v57 }
  0x4c   : > { %1261 = vmatprep.subr.bf16.mxu1 %v1387_v3  ;;  %1333 = vmatprep.subr.bf16.mxu0 %v1387_v3 }
  0x4d   : > { %1102 = vmatprep.mubr.msk.f32.mxu1 %vm1388_vm0, %v1389_v11  ;;  %1207 = vmatprep.mubr.msk.f32.mxu0 %vm1388_vm0, %v1389_v11  ;;  %v1271_v11 = vpack.c.bf16 %v1616_v5, %v1613_v4 }
  0x4f   : > { %1263 = vmatpush3.bf16.msra.mxu1 %v1262_v51  ;;  %1335 = vmatpush3.bf16.msra.mxu0 %v1453_v13  ;;  %v1274_v13 = vpack.c.bf16 %v1634_v20, %v1629_v19 }
  0x50   : > { %1264 = vmatprep.subr.bf16.mxu1 %v1387_v3  ;;  %1336 = vmatprep.subr.bf16.mxu0 %v1387_v3 }
  0x53   : > { %1266 = vmatpush3.bf16.msra.mxu1 %v1265_v29  ;;  %1338 = vmatpush3.bf16.msra.mxu0 %v1474_v18  ;;  %v1277_v18 = vpack.c.bf16 %v1650_v34, %v1645_v28 }
  0x54   : > { %1267 = vmatprep.subr.bf16.mxu1 %v1387_v3  ;;  %1339 = vmatprep.subr.bf16.mxu0 %v1387_v3 }
  0x57   : > { %1269 = vmatpush3.bf16.msra.mxu1 %v1268_v12  ;;  %1341 = vmatpush3.bf16.msra.mxu0 %v1497_v23  ;;  %v1280_v23 = vpack.c.bf16 %v1670_v56, %v1665_v42 }
  0x58   : > { %1270 = vmatprep.subr.bf16.mxu1 %v1387_v3  ;;  %1342 = vmatprep.subr.bf16.mxu0 %v1387_v3 }
  0x5b   : > { %1272 = vmatpush3.bf16.msra.mxu1 %v1271_v11  ;;  %1344 = vmatpush3.bf16.msra.mxu0 %v1521_v32 }
  0x5c   : > { %1273 = vmatprep.subr.bf16.mxu1 %v1387_v3  ;;  %1345 = vmatprep.subr.bf16.mxu0 %v1387_v3 }
  0x5f   : > { %1275 = vmatpush3.bf16.msra.mxu1 %v1274_v13  ;;  %1347 = vmatpush3.bf16.msra.mxu0 %v1551_v41 }
  0x60   : > { %1276 = vmatprep.subr.bf16.mxu1 %v1387_v3  ;;  %1348 = vmatprep.subr.bf16.mxu0 %v1387_v3 }
  0x63   : > { %1278 = vmatpush3.bf16.msra.mxu1 %v1277_v18  ;;  %1350 = vmatpush3.bf16.msra.mxu0 %v1584_v53 }
  0x64   : > { %1279 = vmatprep.subr.bf16.mxu1 %v1387_v3  ;;  %1351 = vmatprep.subr.bf16.mxu0 %v1387_v3 }
  0x67   : > { %1281 = vmatpush3.bf16.msra.mxu1 %v1280_v23  ;;  %1353 = vmatpush3.bf16.msra.mxu0 %v1607_v63 }
  0x6a   : > { %1103 = vmatmul.mubr.f32.vlgmr.msra.gmra.mrb[0].mxu1 %v1543_v40  ;;  %1208 = vmatmul.mubr.f32.vlgmr.msra.gmra.mrb[0].mxu0 %v1515_v30 }
 0x13d   : > { %v528_v32 = vpop.f32.mrb[0].mxu1  ;;  %v823_v37 = vpop.f32.mrb[0].mxu0 }
 0x13e   : > { %v1354_v38 = vadd.f32 %v528_v32, %v185_v31  ;;  %v1104_v41 = vpop.f32.mrb[1].mxu1  ;;  %v1209_v47 = vpop.f32.mrb[1].mxu0 }
 0x140   : > { %v1355_v48 = vadd.f32 %v1354_v38, %v823_v37 }
 0x142   : > { %v895_v53 = vmul.f32 -1.442695, %v1355_v48 }
 0x144   : > { %1375 = vpow2.f32 %v895_v53 }
 0x14e   : > { %v1376_v57 = vpop.eup %1375 }
 0x14f   : > { %v830_v3 = vadd.f32 1.0, %v1376_v57 }
 0x151   : > { %1377 = vrcp.f32 %v830_v3 }
 0x15b   : > { %v1378_v30 = vpop.eup %1377 }
 0x15c   : > { %834 = vst.msk [vmem:[%s166_s28] sm:$0xff] %vm833_vm1, %v1378_v30 }
 0x15d PF: > { %s14_s14 = sadd.s32 1, %s1385_s14  }
 0x15e   : > { %p11_p4 = scmp.ge.s32.totalorder %s14_s14, 5  }
 0x160   :  { %13 = sbr.rel (!%p11_p4) target bundleno = 2 (0x2), region = 62 }

</bundles_post_ra>
